<compile_context>
chip_gen: v6e
topology: v6e:2x2x1
jax: 0.10.0
libtpu: 0.0.40
codegen_flags: <defaults>
</compile_context>

<pallas_src>
import functools

import jax
import jax.numpy as jnp
from jax.experimental import pallas as pl
from jax.experimental.pallas import tpu as pltpu


def _round_up(x, m):
    return ((x + m - 1) // m) * m


def lnp_kernel(x_ref, w_ref, b_ref, out_ref):
    # Single fused matmul + bias + exp.  Matmul accumulates in f32 on the MXU,
    # bias add (VPU) and exp (EUP) stay f32.
    x = x_ref[...]                                                  # (TB, D_in)
    y = jnp.dot(x, w_ref[...], preferred_element_type=jnp.float32)  # (TB, N_pad)
    out_ref[...] = jnp.exp(y + b_ref[...])                          # firing rate


def _make_x_spec(batch_tile, d_in, num_steps):
    idx = lambda i: (i, 0)
    if num_steps >= 4:
        # Deeper input buffering only pays off when there are enough grid
        # steps; fall back gracefully if this jax version lacks pipeline_mode.
        try:
            return pl.BlockSpec((batch_tile, d_in), idx,
                                pipeline_mode=pl.Buffered(3))
        except TypeError:
            pass
    return pl.BlockSpec((batch_tile, d_in), idx)


@functools.partial(jax.jit, static_argnames=("batch_tile", "use_bf16"))
def lnp_forward(x, w1, b1, w2, b2, *, batch_tile=None, use_bf16=False):
    B, D_in = x.shape
    N = w2.shape[1]                      # n_neurons

    # ---- collapse the two bias-only linear layers (done once, outside kernel)
    w = jnp.dot(w1, w2, preferred_element_type=jnp.float32)        # (D_in, N)
    b = jnp.dot(b1, w2, preferred_element_type=jnp.float32) + b2   # (1, N)

    # ---- pad output features to a lane-dense multiple of 128
    N_pad = _round_up(max(N, 128), 128)
    if N_pad != N:
        w = jnp.pad(w, ((0, 0), (0, N_pad - N)))
        b = jnp.pad(b, ((0, 0), (0, N_pad - N)))

    # ---- optional bf16 matmul inputs (v6e/v7x); bias/exp stay f32
    if use_bf16:
        x_in = x.astype(jnp.bfloat16)
        w = w.astype(jnp.bfloat16)
    else:
        x_in = x
    x_itemsize = 2 if use_bf16 else 4

    # ---- pick batch tile (multiple of 8) and pad ragged batches
    if batch_tile is None:
        batch_tile = min(1024, _round_up(B, 8))
    batch_tile = max(8, _round_up(batch_tile, 8))

    # Keep the double/triple-buffered footprint comfortably under v7x's VMEM.
    def _budget(tb, x_bufs):
        return (x_bufs * tb * D_in * x_itemsize          # x tiles
                + 2 * tb * N_pad * 4                     # output tiles
                + D_in * N_pad * x_itemsize + N_pad * 4  # resident W, b
                )
    VMEM_CAP = 40 << 20
    while batch_tile > 8 and _budget(batch_tile, 3) > VMEM_CAP:
        batch_tile = max(8, _round_up(batch_tile // 2, 8))

    num_steps = pl.cdiv(B, batch_tile)
    B_pad = num_steps * batch_tile
    if B_pad != B:
        x_in = jnp.pad(x_in, ((0, B_pad - B), (0, 0)))

    vmem_limit = min(max(int(_budget(batch_tile, 3) * 1.5) + (4 << 20),
                         16 << 20),
                     60 << 20)

    out_padded = pl.pallas_call(
        lnp_kernel,
        out_shape=jax.ShapeDtypeStruct((B_pad, N_pad), jnp.float32),
        grid_spec=pltpu.PrefetchScalarGridSpec(
            num_scalar_prefetch=0,
            grid=(num_steps,),
            in_specs=[
                _make_x_spec(batch_tile, D_in, num_steps),     # x tile (streamed)
                pl.BlockSpec((D_in, N_pad), lambda i: (0, 0)),  # fused W (resident)
                pl.BlockSpec((1, N_pad), lambda i: (0, 0)),     # fused bias
            ],
            out_specs=pl.BlockSpec((batch_tile, N_pad), lambda i: (i, 0)),
        ),
        compiler_params=pltpu.CompilerParams(
            dimension_semantics=("parallel",),
            vmem_limit_bytes=vmem_limit,
        ),
    )(x_in, w, b)

    return out_padded[:B, :N]


def init_params(key, input_dim, n_neurons, hidden=50):
    # Deterministic init mimicking nn.Linear's uniform(-1/sqrt(fan_in), ...).
    # Weights stored transposed w.r.t. PyTorch: (in_features, out_features).
    k1, k2, k3, k4 = jax.random.split(key, 4)
    bound1 = 1.0 / jnp.sqrt(input_dim)
    bound2 = 1.0 / jnp.sqrt(hidden)
    w1 = jax.random.uniform(k1, (input_dim, hidden), jnp.float32, -bound1, bound1)
    b1 = jax.random.uniform(k2, (1, hidden), jnp.float32, -bound1, bound1)
    w2 = jax.random.uniform(k3, (hidden, n_neurons), jnp.float32, -bound2, bound2)
    b2 = jax.random.uniform(k4, (1, n_neurons), jnp.float32, -bound2, bound2)
    return w1, b1, w2, b2


def _reference(x, w1, b1, w2, b2):
    return jnp.exp((x @ w1 + b1) @ w2 + b2)


if __name__ == "__main__":
    key = jax.random.PRNGKey(0)
    kx, kp, kx2 = jax.random.split(key, 3)

    # Small shapes consistent with the module.
    batch, input_dim, n_neurons = 8, 32, 16
    x = jax.random.normal(kx, (batch, input_dim), jnp.float32)
    w1, b1, w2, b2 = init_params(kp, input_dim, n_neurons)

    out = lnp_forward(x, w1, b1, w2, b2)
    out = jax.block_until_ready(out)
    ref = _reference(x, w1, b1, w2, b2)
    assert out.shape == (batch, n_neurons)
    # W1@W2 fusion changes associativity slightly; exp amplifies, so use a
    # mildly looser tolerance than bit-exact.
    assert jnp.allclose(out, ref, rtol=1e-4, atol=1e-5), "small-batch mismatch"

    # Exercise the multi-step grid + ragged-batch padding path.
    B2 = 300  # not a multiple of the tile
    x2 = jax.random.normal(kx2, (B2, input_dim), jnp.float32)
    out2 = jax.block_until_ready(
        lnp_forward(x2, w1, b1, w2, b2, batch_tile=128))
    ref2 = _reference(x2, w1, b1, w2, b2)
    assert out2.shape == (B2, n_neurons)
    assert jnp.allclose(out2, ref2, rtol=1e-4, atol=1e-5), "tiled-batch mismatch"

    print("KERNEL_OK")
</pallas_src>

<mosaic_0001>
module attributes {stable_mosaic.version = 11 : i64} {
  func.func @lnp_kernel(%arg0: i32, %arg1: memref<8x32xf32, #tpu.memory_space<vmem>>, %arg2: memref<32x128xf32, #tpu.memory_space<vmem>>, %arg3: memref<1x128xf32, #tpu.memory_space<vmem>>, %arg4: memref<8x128xf32, #tpu.memory_space<vmem>>) attributes {dimension_semantics = [#tpu.dimension_semantics<parallel>], iteration_bounds = array<i64: 1>, scalar_prefetch = 0 : i64, scratch_operands = 0 : i64, tpu.core_type = #tpu.core_type<tc>, window_params = [{transform_indices = @transform_0, window_bounds = array<i64: 8, 32>}, {pipeline_mode = #tpu.pipeline_mode<synchronous>, transform_indices = @transform_1, window_bounds = array<i64: 32, 128>}, {pipeline_mode = #tpu.pipeline_mode<synchronous>, transform_indices = @transform_2, window_bounds = array<i64: 1, 128>}, {transform_indices = @transform_3, window_bounds = array<i64: 8, 128>}]} {
    %c0 = arith.constant 0 : index
    %c0_0 = arith.constant 0 : index
    %0 = vector.load %arg1[%c0, %c0_0] : memref<8x32xf32, #tpu.memory_space<vmem>>, vector<8x32xf32>
    %c0_1 = arith.constant 0 : index
    %c0_2 = arith.constant 0 : index
    %1 = vector.load %arg2[%c0_1, %c0_2] : memref<32x128xf32, #tpu.memory_space<vmem>>, vector<32x128xf32>
    %cst = arith.constant dense<0.000000e+00> : vector<8x128xf32>
    %2 = tpu.matmul %0, %1, %cst {dimension_numbers = #tpu.dot_dimension_numbers<[1], [0], [0], [1], [0, 0, 1, 1], [], []>} : vector<8x32xf32>, vector<32x128xf32>, vector<8x128xf32> -> vector<8x128xf32>
    %c0_3 = arith.constant 0 : index
    %c0_4 = arith.constant 0 : index
    %3 = vector.load %arg3[%c0_3, %c0_4] : memref<1x128xf32, #tpu.memory_space<vmem>>, vector<1x128xf32>
    %4 = vector.broadcast %3 : vector<1x128xf32> to vector<8x128xf32>
    %5 = arith.addf %2, %4 : vector<8x128xf32>
    %6 = math.exp %5 : vector<8x128xf32>
    %c0_5 = arith.constant 0 : index
    %c0_6 = arith.constant 0 : index
    %7 = vector.load %arg4[%c0_5, %c0_6] : memref<8x128xf32, #tpu.memory_space<vmem>>, vector<8x128xf32>
    tpu.vector_store %arg4[%c0_5, %c0_6], %6 {strides = array<i32>} : memref<8x128xf32, #tpu.memory_space<vmem>>, vector<8x128xf32>,
    return
  }
  func.func @transform_0(%arg0: i32) -> (i32, i32) {
    %c0_i32 = arith.constant 0 : i32
    %c0_i32_0 = arith.constant 0 : i32
    return %arg0, %c0_i32 : i32, i32
  }
  func.func @transform_1(%arg0: i32) -> (i32, i32) {
    %c0_i32 = arith.constant 0 : i32
    %c0_i32_0 = arith.constant 0 : i32
    %c0_i32_1 = arith.constant 0 : i32
    return %c0_i32, %c0_i32_0 : i32, i32
  }
  func.func @transform_2(%arg0: i32) -> (i32, i32) {
    %c0_i32 = arith.constant 0 : i32
    %c0_i32_0 = arith.constant 0 : i32
    %c0_i32_1 = arith.constant 0 : i32
    return %c0_i32, %c0_i32_0 : i32, i32
  }
  func.func @transform_3(%arg0: i32) -> (i32, i32) {
    %c0_i32 = arith.constant 0 : i32
    %c0_i32_0 = arith.constant 0 : i32
    return %arg0, %c0_i32 : i32, i32
  }
}

</mosaic_0001>

<bundles_post_ra>
// kernel: lnp_forward.1
= control target key start
LH: loop header
LB: loop body
LE: loop exit
PB: predicated region body
PF: predicated region fallthrough
CT: control target
= control target key end

     0   :  { %v163_v1 = vmov 0.0   ;;  %vm164_vm0 = vmmov 0   ;;  %s207_s0 = inlined_call_operand.vmem [shape: f32[8,32], index: 0, kind: input, shape index: {}]   ;;  %s208_s1 = inlined_call_operand.vmem [shape: f32[32,128], index: 1, kind: input, shape index: {}]   ;;  %s209_s2 = inlined_call_operand.vmem [shape: f32[1,128], index: 2, kind: input, shape index: {}]   ;;  %s210_s3 = inlined_call_operand.hbm [shape: f32[8,128], index: 3, kind: output, shape index: {}]  }
   0x1   :  { %v19_v0 = vld [vmem:[%s208_s1 + $0x18] sm:$0xff]  ;;  %125 = vmatprep.subr.mxu0 %v163_v1  ;;  %v18_v2 = vld [vmem:[%s208_s1 + $0x10] sm:$0xff]  ;;  %133 = vmatprep.mubr.msk.f32.mxu0 %vm164_vm0, %v163_v1 }
   0x2   :  { %126 = vmatpush3.msra.mxu0 %v19_v0 }
   0x3   :  { %8 = vsyncpa [#allocation3], 0  ;;  %127 = vmatprep.subr.mxu0 %v163_v1  ;;  %v17_v3 = vld [vmem:[%s208_s1 + $0x8] sm:$0xff]  ;;  %v16_v4 = vld [vmem:[%s208_s1] sm:$0xff]  ;;  %vm27_vm1 = vcmask 261120   ;;  %s165_s24 = smov [#allocation2]  }
   0x4   :  { %128 = vmatpush3.msra.mxu0 %v18_v2  ;;  %v15_v5 = vld [vmem:[%s207_s0] sm:$0xff]  ;;  %s110_s1 = sshll.u32 %s165_s24, 4  ;;  %s111_s1 = int_to_ptr.vmem [resolvable:$true] %s110_s1 }
   0x5   :  { %129 = vmatprep.subr.mxu0 %v163_v1  ;;  %v118_v6 = vld [vmem:[%s209_s2] ss:$0 sm:$0xff]  ;;  %s141_s25 = scalar_lea.vmem %s111_s1, 128  ;;  %p146_p1 = scmp.lt.s32.totalorder %s111_s1, %s111_s1 }
   0x6   :  { %130 = vmatpush3.msra.mxu0 %v17_v3  ;;  %p142_p0 = scmp.ne.s32.totalorder %s111_s1, %s141_s25  ;;  %p147_p2 = scmp.lt.s32.totalorder %s141_s25, %s141_s25 }
   0x7   :  { %131 = vmatprep.subr.mxu0 %v163_v1 }
   0x8   :  { %132 = vmatpush3.msra.mxu0 %v16_v4  ;;  %p148_p3 = por %p147_p2, %p146_p1 }
   0x9   :  { %134 = vmatmul.mubr.msk.f32.vlgmr.msra.gmra.mxu0 %vm27_vm1, %v15_v5 }
   0xa   :  { %p149_p4 = pnand %p148_p3, %p142_p0 }
  0xc9   :  { %v97_v7 = vpop.f32.mrf.mxu0 }
  0xca   :  { %v98_v8 = vadd.f32 %v118_v6, %v97_v7 }
  0xcb   :  { %v135_v9 = vpop.f32.mrf.mxu0 }
  0xcc   :  { %v101_v10 = vmul.f32 1.442695, %v98_v8 }
  0xce   :  { %139 = vpow2.f32 %v101_v10 }
  0xdb   :  { %v140_v11 = vpop.eup %139 }
  0xdc   :  { %103 = vst [vmem:[#allocation2] sm:$0xff] %v140_v11 }
  0xdd   :  { %152 = shalt.err (!%p149_p4)
}
  0xde   :  { %113 = dma.vmem_to_hbm [thread:$0]  %s111_s1, 128, %s210_s3, [#allocation3]  }
  0xdf   :  { %161 = dma.done.wait [#allocation3], 128  }
  0xe0   :  { %162 = vsyncadd [#allocation3], 4294967168 }
  0xe1   :  { %117 = vsyncpa [#allocation3], 1 }

</bundles_post_ra>
